<compile_context>
chip_gen: v7x
topology: tpu7x:2x2x1
jax: 0.10.0
libtpu: 0.0.40
codegen_flags: <defaults>
</compile_context>

<pallas_src>
import math

import jax
import jax.numpy as jnp
from jax import lax
from jax.experimental import pallas as pl
from jax.experimental.pallas import tpu as pltpu

LEAKY_SLOPE = 0.01   # F.leaky_relu default negative slope
BN_EPS = 1e-5
OUT_PAD = 128        # lane-pad conv2 output channels (lane-dense intermediate)
FC_PAD = 128         # lane-pad fc dims (lane-dense unmasked stores)


def _leaky_relu(x):
    return jnp.where(x > 0, x, LEAKY_SLOPE * x)


def _round_up(n, m):
    return (n + m - 1) // m * m


def _vmem_limit_bytes():
    """Explicit VMEM budget: ~3/4 of physical (v5e/v6e 128 MiB, v7x 64 MiB)."""
    try:
        cap = int(pltpu.get_tpu_info().vmem_capacity_bytes)
    except Exception:
        cap = 64 << 20
    return max(32 << 20, min((cap * 3) // 4, 100 << 20))


# ---------------------------------------------------------------------------
# Fused kernel: A resident in VMEM, read from HBM once.
#   h1  = relu(A @ XW1 + b1)
#   HM  = h1 @ W2                       (lane-padded to 128)
#   z   = leaky(A @ HM + b2)
#   y   = leaky(z @ Wfc1' + bfc1')      (BN folded into fc1)
#   out = y @ Wfc2 + bfc2               (dropout == identity in eval)
# ---------------------------------------------------------------------------
def fused_kernel(a_ref, xw1_ref, b1_ref, w2_ref, b2_ref,
                 wfc1_ref, bfc1_ref, wfc2_ref, bfc2_ref, out_ref):
    a = a_ref[...]                                                        # bf16
    h1 = jnp.maximum(
        jnp.dot(a, xw1_ref[...], preferred_element_type=jnp.float32) + b1_ref[...],
        0.0)
    hm = jnp.dot(h1.astype(jnp.bfloat16), w2_ref[...],
                 preferred_element_type=jnp.float32)
    z = _leaky_relu(
        jnp.dot(a, hm.astype(jnp.bfloat16), preferred_element_type=jnp.float32)
        + b2_ref[...])
    y = _leaky_relu(
        jnp.dot(z.astype(jnp.bfloat16), wfc1_ref[...],
                preferred_element_type=jnp.float32) + bfc1_ref[...])
    out_ref[...] = (jnp.dot(y.astype(jnp.bfloat16), wfc2_ref[...],
                            preferred_element_type=jnp.float32) + bfc2_ref[...])


# ---------------------------------------------------------------------------
# Streaming kernel 1 (2-D grid: rows "parallel", K "arbitrary"):
#   acc_i += A[i,k] @ XW1[k]   ;   at last k:  HM_i = relu(acc_i + b1) @ W2
# ---------------------------------------------------------------------------
def gcn1_stream_kernel(a_ref, xw1_ref, b1_ref, w2_ref, hm_ref, acc_ref):
    k = pl.program_id(1)

    @pl.when(k == 0)
    def _():
        acc_ref[...] = jnp.zeros_like(acc_ref)

    acc_ref[...] += jnp.dot(a_ref[...], xw1_ref[...],
                            preferred_element_type=jnp.float32)

    @pl.when(k == pl.num_programs(1) - 1)
    def _():
        h1 = jnp.maximum(acc_ref[...] + b1_ref[...], 0.0)
        hm_ref[...] = jnp.dot(h1.astype(jnp.bfloat16), w2_ref[...],
                              preferred_element_type=jnp.float32
                              ).astype(hm_ref.dtype)


# ---------------------------------------------------------------------------
# Streaming kernel 2:
#   acc_i += A[i,k] @ HM[k]    ;   at last k: fc epilogue (BN folded, eval dropout)
# ---------------------------------------------------------------------------
def gcn2_fc_stream_kernel(a_ref, hm_ref, b2_ref, wfc1_ref, bfc1_ref,
                          wfc2_ref, bfc2_ref, out_ref, acc_ref):
    k = pl.program_id(1)

    @pl.when(k == 0)
    def _():
        acc_ref[...] = jnp.zeros_like(acc_ref)

    acc_ref[...] += jnp.dot(a_ref[...], hm_ref[...],
                            preferred_element_type=jnp.float32)

    @pl.when(k == pl.num_programs(1) - 1)
    def _():
        z = _leaky_relu(acc_ref[...] + b2_ref[...])
        y = _leaky_relu(jnp.dot(z.astype(jnp.bfloat16), wfc1_ref[...],
                                preferred_element_type=jnp.float32) + bfc1_ref[...])
        out_ref[...] = (jnp.dot(y.astype(jnp.bfloat16), wfc2_ref[...],
                                preferred_element_type=jnp.float32) + bfc2_ref[...])


# ---------------------------------------------------------------------------
# Host-side graph densification & parameter prep (plain JAX)
# ---------------------------------------------------------------------------
def normalized_adjacency(edge_index, num_nodes):
    """Dense D^-1/2 (A + I) D^-1/2 matching PyG GCNConv (add_self_loops=True)."""
    src = edge_index[0]
    dst = edge_index[1]
    adj = jnp.zeros((num_nodes, num_nodes), jnp.float32)
    adj = adj.at[dst, src].add(1.0)                       # scatter-add (PyG parity)
    adj = adj + jnp.eye(num_nodes, dtype=jnp.float32)     # self-loops
    deg = adj.sum(axis=1)
    dinv = jnp.where(deg > 0, lax.rsqrt(deg), 0.0)
    return dinv[:, None] * adj * dinv[None, :]


def _prep_params(params, out_c, fc1_out, fc2_out):
    # PyTorch [out, in] -> [in, out]
    w1 = params["conv1_w"].T.astype(jnp.float32)                  # (cin, hid)
    b1 = params["conv1_b"].reshape(1, -1).astype(jnp.float32)     # (1, hid)
    w2 = params["conv2_w"].T.astype(jnp.float32)                  # (hid, out_c)
    b2 = params["conv2_b"].astype(jnp.float32)                    # (out_c,)
    hid = w1.shape[1]

    # Fold eval-mode BatchNorm affine into fc1.
    scale = params["bn_gamma"] * lax.rsqrt(params["bn_var"] + BN_EPS)
    shift = params["bn_beta"] - params["bn_mean"] * scale
    wfc1 = params["fc1_w"].T.astype(jnp.float32)                  # (out_c, fc1_out)
    wfc1_f = scale[:, None] * wfc1
    bfc1_f = params["fc1_b"] + shift @ wfc1
    wfc2 = params["fc2_w"].T.astype(jnp.float32)                  # (fc1_out, fc2_out)
    bfc2 = params["fc2_b"].astype(jnp.float32)

    # Lane-pad to 128; padded weight rows/cols are zero so they never contribute.
    w2_p = jnp.zeros((hid, OUT_PAD), jnp.float32).at[:, :out_c].set(w2) \
              .astype(jnp.bfloat16)
    b2_p = jnp.zeros((1, OUT_PAD), jnp.float32).at[:, :out_c].set(b2[None, :])
    wfc1_p = jnp.zeros((OUT_PAD, FC_PAD), jnp.float32) \
                .at[:out_c, :fc1_out].set(wfc1_f).astype(jnp.bfloat16)
    bfc1_p = jnp.zeros((1, FC_PAD), jnp.float32).at[:, :fc1_out].set(bfc1_f)
    wfc2_p = jnp.zeros((FC_PAD, FC_PAD), jnp.float32) \
                .at[:fc1_out, :fc2_out].set(wfc2).astype(jnp.bfloat16)
    bfc2_p = jnp.zeros((1, FC_PAD), jnp.float32).at[:, :fc2_out].set(bfc2)
    return w1, b1, w2_p, b2_p, wfc1_p, bfc1_p, wfc2_p, bfc2_p


# ---------------------------------------------------------------------------
# Forward
# ---------------------------------------------------------------------------
def model_deep_forward(x, edge_index, params, *, force_streaming=False,
                       stream_tn=256, stream_tk=1024):
    n, _ = x.shape
    hid = params["conv1_w"].shape[0]
    out_c = params["conv2_w"].shape[0]
    fc1_out = params["fc1_w"].shape[0]
    fc2_out = params["fc2_w"].shape[0]

    vmem_limit = _vmem_limit_bytes()
    (w1, b1, w2_p, b2_p,
     wfc1_p, bfc1_p, wfc2_p, bfc2_p) = _prep_params(params, out_c, fc1_out, fc2_out)

    a = normalized_adjacency(edge_index, n)

    # Fused path iff (double-buffer-conservative) A + resident operands fit VMEM.
    np_fused = _round_up(n, 8)
    fused_bytes = (2 * np_fused * np_fused * 2          # A (assume 2 buffers)
                   + 2 * np_fused * hid * 2             # XW1
                   + 6 * np_fused * FC_PAD * 4          # in-kernel intermediates
                   + (2 << 20))                         # weights / headroom
    use_fused = (not force_streaming) and fused_bytes <= (vmem_limit * 6) // 10

    if use_fused:
        np_ = np_fused
        tn = tk = np_
    else:
        tn = max(8, _round_up(stream_tn, 8))            # row tile ("parallel")
        tk = max(128, _round_up(stream_tk, 128))        # contraction tile
        np_ = _round_up(n, (tn * tk) // math.gcd(tn, tk))

    # Zero-padded bf16 adjacency (padded rows/cols MUST stay zero).
    a_pad = jnp.zeros((np_, np_), jnp.bfloat16).at[:n, :n].set(a.astype(jnp.bfloat16))

    # Precompute XW1 = X @ W1 once (removes the per-tile K=cin matmul).
    xw1 = x.astype(jnp.float32) @ w1
    xw1_pad = jnp.zeros((np_, hid), jnp.bfloat16).at[:n, :].set(xw1.astype(jnp.bfloat16))

    if use_fused:
        flops = (2 * np_ * np_ * hid + 2 * np_ * hid * OUT_PAD
                 + 2 * np_ * np_ * OUT_PAD + 2 * np_ * OUT_PAD * FC_PAD
                 + 2 * np_ * FC_PAD * FC_PAD)
        bytes_acc = (np_ * np_ * 2 + np_ * hid * 2 + np_ * FC_PAD * 4
                     + (hid + OUT_PAD + FC_PAD) * FC_PAD * 2 + 4 * FC_PAD * 4)
        out_pad = pl.pallas_call(
            fused_kernel,
            out_shape=jax.ShapeDtypeStruct((np_, FC_PAD), jnp.float32),
            grid=(1,),
            in_specs=[
                pl.BlockSpec((np_, np_), lambda i: (0, 0)),        # A (read once)
                pl.BlockSpec((np_, hid), lambda i: (0, 0)),        # XW1
                pl.BlockSpec((1, hid), lambda i: (0, 0)),          # b1
                pl.BlockSpec((hid, OUT_PAD), lambda i: (0, 0)),    # W2 (lane-padded)
                pl.BlockSpec((1, OUT_PAD), lambda i: (0, 0)),      # b2
                pl.BlockSpec((OUT_PAD, FC_PAD), lambda i: (0, 0)), # Wfc1 (BN folded)
                pl.BlockSpec((1, FC_PAD), lambda i: (0, 0)),       # bfc1
                pl.BlockSpec((FC_PAD, FC_PAD), lambda i: (0, 0)),  # Wfc2
                pl.BlockSpec((1, FC_PAD), lambda i: (0, 0)),       # bfc2
            ],
            out_specs=pl.BlockSpec((np_, FC_PAD), lambda i: (0, 0)),
            compiler_params=pltpu.CompilerParams(
                dimension_semantics=("arbitrary",),
                vmem_limit_bytes=vmem_limit),
            cost_estimate=pl.CostEstimate(flops=int(flops), transcendentals=0,
                                          bytes_accessed=int(bytes_acc)),
        )(a_pad, xw1_pad, b1, w2_p, b2_p, wfc1_p, bfc1_p, wfc2_p, bfc2_p)
        return out_pad[:n, :fc2_out]

    # --- streaming path: 2-D grid, K-tiled accumulation, VMEM bounded by (tn,tk)
    rt, kt = np_ // tn, np_ // tk
    cparams = pltpu.CompilerParams(
        dimension_semantics=("parallel", "arbitrary"),
        vmem_limit_bytes=vmem_limit)

    flops1 = 2 * np_ * np_ * hid + 2 * np_ * hid * OUT_PAD
    bytes1 = np_ * np_ * 2 + rt * np_ * hid * 2 + np_ * OUT_PAD * 2
    hm = pl.pallas_call(
        gcn1_stream_kernel,
        out_shape=jax.ShapeDtypeStruct((np_, OUT_PAD), jnp.bfloat16),
        grid=(rt, kt),
        in_specs=[
            pl.BlockSpec((tn, tk), lambda i, k: (i, k)),       # A tile
            pl.BlockSpec((tk, hid), lambda i, k: (k, 0)),      # XW1 k-slab
            pl.BlockSpec((1, hid), lambda i, k: (0, 0)),       # b1
            pl.BlockSpec((hid, OUT_PAD), lambda i, k: (0, 0)), # W2
        ],
        out_specs=pl.BlockSpec((tn, OUT_PAD), lambda i, k: (i, 0)),
        scratch_shapes=[pltpu.VMEM((tn, hid), jnp.float32)],
        compiler_params=cparams,
        cost_estimate=pl.CostEstimate(flops=int(flops1), transcendentals=0,
                                      bytes_accessed=int(bytes1)),
    )(a_pad, xw1_pad, b1, w2_p)

    flops2 = (2 * np_ * np_ * OUT_PAD + 2 * np_ * OUT_PAD * FC_PAD
              + 2 * np_ * FC_PAD * FC_PAD)
    bytes2 = np_ * np_ * 2 + rt * np_ * OUT_PAD * 2 + np_ * FC_PAD * 4
    out_pad = pl.pallas_call(
        gcn2_fc_stream_kernel,
        out_shape=jax.ShapeDtypeStruct((np_, FC_PAD), jnp.float32),
        grid=(rt, kt),
        in_specs=[
            pl.BlockSpec((tn, tk), lambda i, k: (i, k)),          # A tile
            pl.BlockSpec((tk, OUT_PAD), lambda i, k: (k, 0)),     # HM k-slab
            pl.BlockSpec((1, OUT_PAD), lambda i, k: (0, 0)),      # b2
            pl.BlockSpec((OUT_PAD, FC_PAD), lambda i, k: (0, 0)), # Wfc1 (BN folded)
            pl.BlockSpec((1, FC_PAD), lambda i, k: (0, 0)),       # bfc1
            pl.BlockSpec((FC_PAD, FC_PAD), lambda i, k: (0, 0)),  # Wfc2
            pl.BlockSpec((1, FC_PAD), lambda i, k: (0, 0)),       # bfc2
        ],
        out_specs=pl.BlockSpec((tn, FC_PAD), lambda i, k: (i, 0)),
        scratch_shapes=[pltpu.VMEM((tn, OUT_PAD), jnp.float32)],
        compiler_params=cparams,
        cost_estimate=pl.CostEstimate(flops=int(flops2), transcendentals=0,
                                      bytes_accessed=int(bytes2)),
    )(a_pad, hm, b2_p, wfc1_p, bfc1_p, wfc2_p, bfc2_p)

    return out_pad[:n, :fc2_out]


# ---------------------------------------------------------------------------
# Pure-JAX reference (eval-mode)
# ---------------------------------------------------------------------------
def model_deep_reference(x, edge_index, params):
    a = normalized_adjacency(edge_index, x.shape[0])
    h = a @ (x @ params["conv1_w"].T) + params["conv1_b"]
    h = jnp.maximum(h, 0.0)
    h = a @ (h @ params["conv2_w"].T) + params["conv2_b"]
    h = _leaky_relu(h)
    h = (h - params["bn_mean"]) * lax.rsqrt(params["bn_var"] + BN_EPS) \
        * params["bn_gamma"] + params["bn_beta"]
    h = _leaky_relu(h @ params["fc1_w"].T + params["fc1_b"])
    return h @ params["fc2_w"].T + params["fc2_b"]


def init_params(key, in_channels, hidden_channels, out_channels):
    ks = jax.random.split(key, 8)
    norm = lambda k, s: (0.1 * jax.random.normal(k, s)).astype(jnp.float32)
    return {
        "conv1_w": norm(ks[0], (hidden_channels, in_channels)),
        "conv1_b": norm(ks[1], (hidden_channels,)),
        "conv2_w": norm(ks[2], (out_channels, hidden_channels)),
        "conv2_b": norm(ks[3], (out_channels,)),
        "bn_gamma": jnp.ones((out_channels,), jnp.float32),
        "bn_beta": jnp.zeros((out_channels,), jnp.float32),
        "bn_mean": jnp.zeros((out_channels,), jnp.float32),
        "bn_var": jnp.ones((out_channels,), jnp.float32),
        "fc1_w": norm(ks[4], (10, out_channels)),
        "fc1_b": norm(ks[5], (10,)),
        "fc2_w": norm(ks[6], (5, 10)),
        "fc2_b": norm(ks[7], (5,)),
    }


def _ring_graph(n_nodes):
    idx = jnp.arange(n_nodes, dtype=jnp.int32)
    src = jnp.concatenate([idx, (idx + 1) % n_nodes, idx, (idx + 7) % n_nodes])
    dst = jnp.concatenate([(idx + 1) % n_nodes, idx, (idx + 7) % n_nodes, idx])
    return jnp.stack([src, dst], axis=0)


if __name__ == "__main__":
    IN_C, HID_C, OUT_C = 4, 32, 16
    key = jax.random.PRNGKey(0)
    k_x1, k_x2, k_p = jax.random.split(key, 3)
    params = init_params(k_p, IN_C, HID_C, OUT_C)

    # --- test 1: small graph -> fused A-resident kernel -----------------------
    N1 = 16
    x1 = jax.random.normal(k_x1, (N1, IN_C), dtype=jnp.float32)
    e1 = _ring_graph(N1)
    out1 = model_deep_forward(x1, e1, params)
    jax.block_until_ready(out1)
    assert out1.shape == (N1, 5), out1.shape
    ref1 = model_deep_reference(x1, e1, params)
    assert jnp.all(jnp.isfinite(out1)), "non-finite output (fused)"
    assert jnp.allclose(out1, ref1, atol=5e-2, rtol=5e-2), \
        f"fused mismatch: max abs err {jnp.max(jnp.abs(out1 - ref1))}"

    # --- test 2: larger graph; exercise both fused and K-tiled streaming paths -
    N2 = 200
    x2 = jax.random.normal(k_x2, (N2, IN_C), dtype=jnp.float32)
    e2 = _ring_graph(N2)
    ref2 = model_deep_reference(x2, e2, params)

    out2_fused = model_deep_forward(x2, e2, params)
    out2_stream = model_deep_forward(x2, e2, params, force_streaming=True,
                                     stream_tn=128, stream_tk=128)
    jax.block_until_ready((out2_fused, out2_stream))
    assert out2_fused.shape == (N2, 5) and out2_stream.shape == (N2, 5)
    assert jnp.all(jnp.isfinite(out2_fused)) and jnp.all(jnp.isfinite(out2_stream))
    assert jnp.allclose(out2_fused, ref2, atol=5e-2, rtol=5e-2), \
        f"fused(200) mismatch: max abs err {jnp.max(jnp.abs(out2_fused - ref2))}"
    assert jnp.allclose(out2_stream, ref2, atol=5e-2, rtol=5e-2), \
        f"stream(200) mismatch: max abs err {jnp.max(jnp.abs(out2_stream - ref2))}"
    assert jnp.allclose(out2_fused, out2_stream, atol=1e-2, rtol=1e-2), \
        "fused vs streaming path disagree"

    print("KERNEL_OK")
</pallas_src>

<mosaic_0001>
module attributes {stable_mosaic.version = 11 : i64} {
  func.func @fused_kernel(%arg0: i32, %arg1: memref<16x16xbf16, #tpu.memory_space<vmem>>, %arg2: memref<16x32xbf16, #tpu.memory_space<vmem>>, %arg3: memref<1x32xf32, #tpu.memory_space<vmem>>, %arg4: memref<32x128xbf16, #tpu.memory_space<vmem>>, %arg5: memref<1x128xf32, #tpu.memory_space<vmem>>, %arg6: memref<128x128xbf16, #tpu.memory_space<vmem>>, %arg7: memref<1x128xf32, #tpu.memory_space<vmem>>, %arg8: memref<128x128xbf16, #tpu.memory_space<vmem>>, %arg9: memref<1x128xf32, #tpu.memory_space<vmem>>, %arg10: memref<16x128xf32, #tpu.memory_space<vmem>>) attributes {dimension_semantics = [#tpu.dimension_semantics<arbitrary>], iteration_bounds = array<i64: 1>, scalar_prefetch = 0 : i64, scratch_operands = 0 : i64, tpu.core_type = #tpu.core_type<tc>, window_params = [{pipeline_mode = #tpu.pipeline_mode<synchronous>, transform_indices = @transform_0, window_bounds = array<i64: 16, 16>}, {pipeline_mode = #tpu.pipeline_mode<synchronous>, transform_indices = @transform_1, window_bounds = array<i64: 16, 32>}, {pipeline_mode = #tpu.pipeline_mode<synchronous>, transform_indices = @transform_2, window_bounds = array<i64: 1, 32>}, {pipeline_mode = #tpu.pipeline_mode<synchronous>, transform_indices = @transform_3, window_bounds = array<i64: 32, 128>}, {pipeline_mode = #tpu.pipeline_mode<synchronous>, transform_indices = @transform_4, window_bounds = array<i64: 1, 128>}, {pipeline_mode = #tpu.pipeline_mode<synchronous>, transform_indices = @transform_5, window_bounds = array<i64: 128, 128>}, {pipeline_mode = #tpu.pipeline_mode<synchronous>, transform_indices = @transform_6, window_bounds = array<i64: 1, 128>}, {pipeline_mode = #tpu.pipeline_mode<synchronous>, transform_indices = @transform_7, window_bounds = array<i64: 128, 128>}, {pipeline_mode = #tpu.pipeline_mode<synchronous>, transform_indices = @transform_8, window_bounds = array<i64: 1, 128>}, {pipeline_mode = #tpu.pipeline_mode<synchronous>, transform_indices = @transform_9, window_bounds = array<i64: 16, 128>}]} {
    %c0 = arith.constant 0 : index
    %c0_0 = arith.constant 0 : index
    %0 = vector.load %arg1[%c0, %c0_0] : memref<16x16xbf16, #tpu.memory_space<vmem>>, vector<16x16xbf16>
    %c0_1 = arith.constant 0 : index
    %c0_2 = arith.constant 0 : index
    %1 = vector.load %arg2[%c0_1, %c0_2] : memref<16x32xbf16, #tpu.memory_space<vmem>>, vector<16x32xbf16>
    %cst = arith.constant dense<0.000000e+00> : vector<16x32xf32>
    %2 = tpu.matmul %0, %1, %cst {dimension_numbers = #tpu.dot_dimension_numbers<[1], [0], [0], [1], [0, 0, 1, 1], [], []>} : vector<16x16xbf16>, vector<16x32xbf16>, vector<16x32xf32> -> vector<16x32xf32>
    %c0_3 = arith.constant 0 : index
    %c0_4 = arith.constant 0 : index
    %3 = vector.load %arg3[%c0_3, %c0_4] : memref<1x32xf32, #tpu.memory_space<vmem>>, vector<1x32xf32>
    %4 = vector.broadcast %3 : vector<1x32xf32> to vector<16x32xf32>
    %5 = arith.addf %2, %4 : vector<16x32xf32>
    %cst_5 = arith.constant 0.000000e+00 : f32
    %6 = vector.broadcast %cst_5 : f32 to vector<16x32xf32>
    %7 = arith.maximumf %5, %6 : vector<16x32xf32>
    %8 = arith.truncf %7 : vector<16x32xf32> to vector<16x32xbf16>
    %c0_6 = arith.constant 0 : index
    %c0_7 = arith.constant 0 : index
    %9 = vector.load %arg4[%c0_6, %c0_7] : memref<32x128xbf16, #tpu.memory_space<vmem>>, vector<32x128xbf16>
    %cst_8 = arith.constant dense<0.000000e+00> : vector<16x128xf32>
    %10 = tpu.matmul %8, %9, %cst_8 {dimension_numbers = #tpu.dot_dimension_numbers<[1], [0], [0], [1], [0, 0, 1, 1], [], []>} : vector<16x32xbf16>, vector<32x128xbf16>, vector<16x128xf32> -> vector<16x128xf32>
    %11 = arith.truncf %10 : vector<16x128xf32> to vector<16x128xbf16>
    %cst_9 = arith.constant dense<0.000000e+00> : vector<16x128xf32>
    %12 = tpu.matmul %0, %11, %cst_9 {dimension_numbers = #tpu.dot_dimension_numbers<[1], [0], [0], [1], [0, 0, 1, 1], [], []>} : vector<16x16xbf16>, vector<16x128xbf16>, vector<16x128xf32> -> vector<16x128xf32>
    %c0_10 = arith.constant 0 : index
    %c0_11 = arith.constant 0 : index
    %13 = vector.load %arg5[%c0_10, %c0_11] : memref<1x128xf32, #tpu.memory_space<vmem>>, vector<1x128xf32>
    %14 = vector.broadcast %13 : vector<1x128xf32> to vector<16x128xf32>
    %15 = arith.addf %12, %14 : vector<16x128xf32>
    %cst_12 = arith.constant 0.000000e+00 : f32
    %16 = vector.broadcast %cst_12 : f32 to vector<16x128xf32>
    %17 = arith.cmpf ogt, %15, %16 : vector<16x128xf32>
    %cst_13 = arith.constant 0.00999999977 : f32
    %18 = vector.broadcast %cst_13 : f32 to vector<16x128xf32>
    %19 = arith.mulf %18, %15 : vector<16x128xf32>
    %20 = arith.select %17, %15, %19 : vector<16x128xi1>, vector<16x128xf32>
    %21 = arith.truncf %20 : vector<16x128xf32> to vector<16x128xbf16>
    %c0_14 = arith.constant 0 : index
    %c0_15 = arith.constant 0 : index
    %22 = vector.load %arg6[%c0_14, %c0_15] : memref<128x128xbf16, #tpu.memory_space<vmem>>, vector<128x128xbf16>
    %cst_16 = arith.constant dense<0.000000e+00> : vector<16x128xf32>
    %23 = tpu.matmul %21, %22, %cst_16 {dimension_numbers = #tpu.dot_dimension_numbers<[1], [0], [0], [1], [0, 0, 1, 1], [], []>} : vector<16x128xbf16>, vector<128x128xbf16>, vector<16x128xf32> -> vector<16x128xf32>
    %c0_17 = arith.constant 0 : index
    %c0_18 = arith.constant 0 : index
    %24 = vector.load %arg7[%c0_17, %c0_18] : memref<1x128xf32, #tpu.memory_space<vmem>>, vector<1x128xf32>
    %25 = vector.broadcast %24 : vector<1x128xf32> to vector<16x128xf32>
    %26 = arith.addf %23, %25 : vector<16x128xf32>
    %cst_19 = arith.constant 0.000000e+00 : f32
    %27 = vector.broadcast %cst_19 : f32 to vector<16x128xf32>
    %28 = arith.cmpf ogt, %26, %27 : vector<16x128xf32>
    %cst_20 = arith.constant 0.00999999977 : f32
    %29 = vector.broadcast %cst_20 : f32 to vector<16x128xf32>
    %30 = arith.mulf %29, %26 : vector<16x128xf32>
    %31 = arith.select %28, %26, %30 : vector<16x128xi1>, vector<16x128xf32>
    %32 = arith.truncf %31 : vector<16x128xf32> to vector<16x128xbf16>
    %c0_21 = arith.constant 0 : index
    %c0_22 = arith.constant 0 : index
    %33 = vector.load %arg8[%c0_21, %c0_22] : memref<128x128xbf16, #tpu.memory_space<vmem>>, vector<128x128xbf16>
    %cst_23 = arith.constant dense<0.000000e+00> : vector<16x128xf32>
    %34 = tpu.matmul %32, %33, %cst_23 {dimension_numbers = #tpu.dot_dimension_numbers<[1], [0], [0], [1], [0, 0, 1, 1], [], []>} : vector<16x128xbf16>, vector<128x128xbf16>, vector<16x128xf32> -> vector<16x128xf32>
    %c0_24 = arith.constant 0 : index
    %c0_25 = arith.constant 0 : index
    %35 = vector.load %arg9[%c0_24, %c0_25] : memref<1x128xf32, #tpu.memory_space<vmem>>, vector<1x128xf32>
    %36 = vector.broadcast %35 : vector<1x128xf32> to vector<16x128xf32>
    %37 = arith.addf %34, %36 : vector<16x128xf32>
    %c0_26 = arith.constant 0 : index
    %c0_27 = arith.constant 0 : index
    %38 = vector.load %arg10[%c0_26, %c0_27] : memref<16x128xf32, #tpu.memory_space<vmem>>, vector<16x128xf32>
    tpu.vector_store %arg10[%c0_26, %c0_27], %37 {strides = array<i32>} : memref<16x128xf32, #tpu.memory_space<vmem>>, vector<16x128xf32>,
    return
  }
  func.func @transform_0(%arg0: i32) -> (i32, i32) {
    %c0_i32 = arith.constant 0 : i32
    %c0_i32_0 = arith.constant 0 : i32
    %c0_i32_1 = arith.constant 0 : i32
    return %c0_i32, %c0_i32_0 : i32, i32
  }
  func.func @transform_1(%arg0: i32) -> (i32, i32) {
    %c0_i32 = arith.constant 0 : i32
    %c0_i32_0 = arith.constant 0 : i32
    %c0_i32_1 = arith.constant 0 : i32
    return %c0_i32, %c0_i32_0 : i32, i32
  }
  func.func @transform_2(%arg0: i32) -> (i32, i32) {
    %c0_i32 = arith.constant 0 : i32
    %c0_i32_0 = arith.constant 0 : i32
    %c0_i32_1 = arith.constant 0 : i32
    return %c0_i32, %c0_i32_0 : i32, i32
  }
  func.func @transform_3(%arg0: i32) -> (i32, i32) {
    %c0_i32 = arith.constant 0 : i32
    %c0_i32_0 = arith.constant 0 : i32
    %c0_i32_1 = arith.constant 0 : i32
    return %c0_i32, %c0_i32_0 : i32, i32
  }
  func.func @transform_4(%arg0: i32) -> (i32, i32) {
    %c0_i32 = arith.constant 0 : i32
    %c0_i32_0 = arith.constant 0 : i32
    %c0_i32_1 = arith.constant 0 : i32
    return %c0_i32, %c0_i32_0 : i32, i32
  }
  func.func @transform_5(%arg0: i32) -> (i32, i32) {
    %c0_i32 = arith.constant 0 : i32
    %c0_i32_0 = arith.constant 0 : i32
    %c0_i32_1 = arith.constant 0 : i32
    return %c0_i32, %c0_i32_0 : i32, i32
  }
  func.func @transform_6(%arg0: i32) -> (i32, i32) {
    %c0_i32 = arith.constant 0 : i32
    %c0_i32_0 = arith.constant 0 : i32
    %c0_i32_1 = arith.constant 0 : i32
    return %c0_i32, %c0_i32_0 : i32, i32
  }
  func.func @transform_7(%arg0: i32) -> (i32, i32) {
    %c0_i32 = arith.constant 0 : i32
    %c0_i32_0 = arith.constant 0 : i32
    %c0_i32_1 = arith.constant 0 : i32
    return %c0_i32, %c0_i32_0 : i32, i32
  }
  func.func @transform_8(%arg0: i32) -> (i32, i32) {
    %c0_i32 = arith.constant 0 : i32
    %c0_i32_0 = arith.constant 0 : i32
    %c0_i32_1 = arith.constant 0 : i32
    return %c0_i32, %c0_i32_0 : i32, i32
  }
  func.func @transform_9(%arg0: i32) -> (i32, i32) {
    %c0_i32 = arith.constant 0 : i32
    %c0_i32_0 = arith.constant 0 : i32
    %c0_i32_1 = arith.constant 0 : i32
    return %c0_i32, %c0_i32_0 : i32, i32
  }
}

</mosaic_0001>

<bundles_post_ra>
// kernel: tpu_custom_call.1
= control target key start
LH: loop header
LB: loop body
LE: loop exit
PB: predicated region body
PF: predicated region fallthrough
CT: control target
= control target key end

     0   :  { %14 = vsyncpa [#allocation3], 0  ;;  %s1032_s0 = inlined_call_operand.hbm [shape: bf16[16,16], index: 0, kind: input, shape index: {}]   ;;  %s1033_s1 = inlined_call_operand.hbm [shape: bf16[16,32], index: 1, kind: input, shape index: {}]   ;;  %s1034_s2 = inlined_call_operand.vmem [shape: f32[1,32], index: 2, kind: input, shape index: {}]   ;;  %s1035_s3 = inlined_call_operand.hbm [shape: bf16[32,128], index: 3, kind: input, shape index: {}]   ;;  %s1036_s4 = inlined_call_operand.vmem [shape: f32[1,128], index: 4, kind: input, shape index: {}]   ;;  %s1037_s5 = inlined_call_operand.hbm [shape: bf16[128,128], index: 5, kind: input, shape index: {}]   ;;  %s1038_s6 = inlined_call_operand.vmem [shape: f32[1,128], index: 6, kind: input, shape index: {}]   ;;  %s1039_s7 = inlined_call_operand.hbm [shape: bf16[128,128], index: 7, kind: input, shape index: {}]   ;;  %s1040_s8 = inlined_call_operand.vmem [shape: f32[1,128], index: 8, kind: input, shape index: {}]   ;;  %s1041_s9 = inlined_call_operand.hbm [shape: f32[16,128], index: 9, kind: output, shape index: {}]  }
   0x1   :  { %15 = vsyncpa [#allocation6], 0 }
   0x2   :  { %16 = vsyncpa [#allocation9], 0 }
   0x3   :  { %17 = vsyncpa [#allocation4], 0  ;;  %s825_s30 = smov [#allocation5]   ;;  %s826_s11 = smov [#allocation8]  }
   0x4   :  { %s35_s10 = sshll.u32 %s825_s30, 4  ;;  %s63_s12 = sshll.u32 %s826_s11, 4  ;;  %s36_s10 = int_to_ptr.vmem [resolvable:$true] %s35_s10  ;;  %s887_s12 = int_to_ptr.vmem [resolvable:$true] %s63_s12 }
   0x5   :  { %s685_s15 = scalar_lea.hbm %s1033_s1, 128 }
   0x6   :  { %p686_p0 = scmp.ne.s32.totalorder %s1033_s1, %s685_s15  ;;  %p689_p1 = scmp.lt.u32.totalorder %s685_s15, %s1033_s1 }
   0x8   :  { %p691_p2 = pnand %p689_p1, %p686_p0 }
   0xa   :  { %694 = shalt.err (!%p691_p2)
}
   0xb   :  { %s695_s20 = scalar_lea.vmem %s36_s10, 128  ;;  %p700_p4 = scmp.lt.s32.totalorder %s36_s10, %s36_s10 }
   0xc   :  { %p696_p3 = scmp.ne.s32.totalorder %s36_s10, %s695_s20  ;;  %p701_p5 = scmp.lt.s32.totalorder %s695_s20, %s695_s20 }
   0xe   :  { %p702_p6 = por %p701_p5, %p700_p4 }
  0x10   :  { %p703_p7 = pnand %p702_p6, %p696_p3 }
  0x12   :  { %706 = shalt.err (!%p703_p7)
}
  0x13   :  { %s827_s21 = smov 64   ;;  %s828_s22 = smov 4  }
  0x14   :  { %41 = dma.hbm_to_vmem [thread:$0]  %s1033_s1, 128, %s36_s10, [#allocation6], %s827_s21, %s827_s21, %s828_s22  }
  0x15   :  { %s707_s27 = scalar_lea.hbm %s1037_s5, 1024 }
  0x16   :  { %p708_p8 = scmp.ne.s32.totalorder %s1037_s5, %s707_s27  ;;  %p711_p9 = scmp.lt.u32.totalorder %s707_s27, %s1037_s5 }
  0x18   :  { %p713_p10 = pnand %p711_p9, %p708_p8 }
  0x1a   :  { %716 = shalt.err (!%p713_p10)
}
  0x1b   :  { %s717_s13 = scalar_lea.vmem %s887_s12, 1024  ;;  %p722_p12 = scmp.lt.s32.totalorder %s887_s12, %s887_s12 }
  0x1c   :  { %p718_p11 = scmp.ne.s32.totalorder %s887_s12, %s717_s13  ;;  %p723_p13 = scmp.lt.s32.totalorder %s717_s13, %s717_s13 }
  0x1e   :  { %p724_p0 = por %p723_p13, %p722_p12 }
  0x20   :  { %p725_p1 = pnand %p724_p0, %p718_p11 }
  0x22   :  { %728 = shalt.err (!%p725_p1)
}
  0x23   :  { %69 = dma.hbm_to_vmem [thread:$0]  %s1037_s5, 1024, %s887_s12, [#allocation9], %s827_s21, %s827_s21, %s828_s22  }
  0x24   :  { %s829_s14 = smov [#allocation2]   ;;  %s830_s16 = smov [#allocation7]  }
  0x25   :  { %s23_s15 = sshll.u32 %s829_s14, 4  ;;  %s49_s17 = sshll.u32 %s830_s16, 4  ;;  %s24_s15 = int_to_ptr.vmem [resolvable:$true] %s23_s15  ;;  %s924_s17 = int_to_ptr.vmem [resolvable:$true] %s49_s17 }
  0x26   :  { %s729_s20 = scalar_lea.hbm %s1032_s0, 128 }
  0x27   :  { %p730_p2 = scmp.ne.s32.totalorder %s1032_s0, %s729_s20  ;;  %p733_p3 = scmp.lt.u32.totalorder %s729_s20, %s1032_s0 }
  0x29   :  { %p735_p4 = pnand %p733_p3, %p730_p2 }
  0x2b   :  { %738 = shalt.err (!%p735_p4)
}
  0x2c   :  { %s739_s5 = scalar_lea.vmem %s24_s15, 128  ;;  %p744_p6 = scmp.lt.s32.totalorder %s24_s15, %s24_s15 }
  0x2d   :  { %p740_p5 = scmp.ne.s32.totalorder %s24_s15, %s739_s5  ;;  %p745_p7 = scmp.lt.s32.totalorder %s739_s5, %s739_s5 }
  0x2f   :  { %p746_p8 = por %p745_p7, %p744_p6 }
  0x31   :  { %p747_p9 = pnand %p746_p8, %p740_p5 }
  0x33   :  { %750 = shalt.err (!%p747_p9)
}
  0x34   :  { %29 = dma.hbm_to_vmem [thread:$0]  %s1032_s0, 128, %s24_s15, [#allocation3], %s827_s21, %s827_s21, %s828_s22  }
  0x35   :  { %s751_s30 = scalar_lea.hbm %s1035_s3, 256 }
  0x36   :  { %p752_p10 = scmp.ne.s32.totalorder %s1035_s3, %s751_s30  ;;  %p755_p11 = scmp.lt.u32.totalorder %s751_s30, %s1035_s3 }
  0x38   :  { %p757_p12 = pnand %p755_p11, %p752_p10 }
  0x3a   :  { %760 = shalt.err (!%p757_p12)
}
  0x3b   :  { %s761_s14 = scalar_lea.vmem %s924_s17, 256  ;;  %p766_p0 = scmp.lt.s32.totalorder %s924_s17, %s924_s17 }
  0x3c   :  { %p762_p13 = scmp.ne.s32.totalorder %s924_s17, %s761_s14  ;;  %p767_p1 = scmp.lt.s32.totalorder %s761_s14, %s761_s14 }
  0x3e   :  { %p768_p2 = por %p767_p1, %p766_p0 }
  0x40   :  { %p769_p3 = pnand %p768_p2, %p762_p13 }
  0x42   :  { %772 = shalt.err (!%p769_p3)
}
  0x43   :  { %55 = dma.hbm_to_vmem [thread:$0]  %s1035_s3, 256, %s924_s17, [#allocation6], %s827_s21, %s827_s21, %s828_s22  }
  0x44   :  { %s831_s16 = smov [#allocation10]   ;;  %s773_s23 = scalar_lea.hbm %s1039_s7, 1024 }
  0x45   :  { %s77_s18 = sshll.u32 %s831_s16, 4  ;;  %p774_p4 = scmp.ne.s32.totalorder %s1039_s7, %s773_s23  ;;  %s78_s18 = int_to_ptr.vmem [resolvable:$true] %s77_s18 }
  0x46   :  { %p777_p5 = scmp.lt.u32.totalorder %s773_s23, %s1039_s7 }
  0x48   :  { %p779_p6 = pnand %p777_p5, %p774_p4 }
  0x4a   :  { %782 = shalt.err (!%p779_p6)
}
  0x4b   :  { %s783_s12 = scalar_lea.vmem %s78_s18, 1024  ;;  %p788_p8 = scmp.lt.s32.totalorder %s78_s18, %s78_s18 }
  0x4c   :  { %p784_p7 = scmp.ne.s32.totalorder %s78_s18, %s783_s12  ;;  %p789_p9 = scmp.lt.s32.totalorder %s783_s12, %s783_s12 }
  0x4e   :  { %p790_p10 = por %p789_p9, %p788_p8 }
  0x50   :  { %p791_p11 = pnand %p790_p10, %p784_p7 }
  0x52   :  { %794 = shalt.err (!%p791_p11)
}
  0x53   :  { %83 = dma.hbm_to_vmem [thread:$0]  %s1039_s7, 1024, %s78_s18, [#allocation9], %s827_s21, %s827_s21, %s828_s22  }
  0x54   :  { %817 = dma.done.wait [#allocation3], 128  }
  0x55   :  { %818 = vsyncadd [#allocation3], 4294967168 }
  0x56   :  { %819 = dma.done.wait [#allocation6], 384  }
  0x57   :  { %820 = vsyncadd [#allocation6], 4294966912 }
  0x58   :  { %821 = dma.done.wait [#allocation9], 2048  }
  0x59   :  { %822 = vsyncadd [#allocation9], 4294965248  ;;  %v832_v0 = vmov 0.0   ;;  %vm833_vm0 = vmmov 0   ;;  %v665_v1 = vld [vmem:[#allocation5] sm:$0xff]   ;;  %v666_v2 = vld [vmem:[#allocation2] sm:$0xff]  }
  0x5a   :  { %593 = vmatprep.subr.bf16.mxu0 %v832_v0  ;;  %595 = vmatprep.mubr.msk.bf16.mxu0 %vm833_vm0, %v832_v0  ;;  %vm124_vm1 = vcmask 130048   ;;  %v667_v3 = vld [vmem:[#allocation7] sm:$0xff]   ;;  %v668_v4 = vld [vmem:[#allocation7 + $0x8] sm:$0xff]   ;;  %v541_v5 = vld [vmem:[%s1034_s2] ss:$0 sm:$0xff]  ;;  %vm188_vm2 = vcmask 261120  }
  0x5b   :  { %599 = vmatprep.subr.bf16.mxu1 %v832_v0  ;;  %603 = vmatprep.mubr.msk.bf16.mxu1 %vm833_vm0, %v832_v0  ;;  %v669_v15 = vld [vmem:[#allocation8] sm:$0xff]   ;;  %v670_v16 = vld [vmem:[#allocation8 + $0x8] sm:$0xff]   ;;  %v671_v17 = vld [vmem:[#allocation8 + $0x10] sm:$0xff]   ;;  %s834_s30 = smov [#allocation11]  }
  0x5c   :  { %594 = vmatpush3.bf16.msra.mxu0 %v665_v1  ;;  %600 = vmatpush3.bf16.msra.mxu1 %v667_v3  ;;  %v672_v18 = vld [vmem:[#allocation8 + $0x18] sm:$0xff]   ;;  %v673_v19 = vld [vmem:[#allocation8 + $0x20] sm:$0xff]   ;;  %v674_v20 = vld [vmem:[#allocation8 + $0x28] sm:$0xff]  }
  0x5d   :  { %607 = vmatprep.subr.bf16.mxu0 %v832_v0  ;;  %601 = vmatprep.subr.bf16.mxu1 %v832_v0  ;;  %v675_v26 = vld [vmem:[#allocation8 + $0x30] sm:$0xff]   ;;  %v676_v27 = vld [vmem:[#allocation8 + $0x38] sm:$0xff]   ;;  %v677_v28 = vld [vmem:[#allocation10] sm:$0xff]  }
  0x5e   :  { %v678_v29 = vld [vmem:[#allocation10 + $0x8] sm:$0xff]   ;;  %v679_v30 = vld [vmem:[#allocation10 + $0x10] sm:$0xff]   ;;  %v680_v31 = vld [vmem:[#allocation10 + $0x18] sm:$0xff]  }
  0x5f   :  { %596 = vmatmul.mubr.msk.bf16.vlgmr.msra.gmra.mrb[0].mxu0 %vm124_vm1, %v666_v2  ;;  %v681_v32 = vld [vmem:[#allocation10 + $0x20] sm:$0xff]   ;;  %v682_v33 = vld [vmem:[#allocation10 + $0x28] sm:$0xff]   ;;  %v683_v46 = vld [vmem:[#allocation10 + $0x30] sm:$0xff]  }
  0x60   :  { %609 = vmatprep.mubr.msk.bf16.mxu0 %vm833_vm0, %v832_v0  ;;  %602 = vmatpush3.bf16.msra.mxu1 %v668_v4  ;;  %v548_v34 = vld [vmem:[%s1036_s4] ss:$0 sm:$0xff]  ;;  %v684_v47 = vld [vmem:[#allocation10 + $0x38] sm:$0xff]  }
  0x61   :  { %613 = vmatprep.subr.bf16.mxu1 %v832_v0  ;;  %v550_v48 = vld [vmem:[%s1038_s6] ss:$0 sm:$0xff]  ;;  %s527_s6 = sshll.u32 %s834_s30, 4  ;;  %s528_s6 = int_to_ptr.vmem [resolvable:$true] %s527_s6 }
  0x62   :  { %v559_v60 = vld [vmem:[%s1040_s8] ss:$0 sm:$0xff]  ;;  %s795_s11 = scalar_lea.vmem %s528_s6, 256  ;;  %p800_p13 = scmp.lt.s32.totalorder %s528_s6, %s528_s6 }
  0x63   :  { %p796_p12 = scmp.ne.s32.totalorder %s528_s6, %s795_s11  ;;  %p801_p0 = scmp.lt.s32.totalorder %s795_s11, %s795_s11 }
  0x65   :  { %p802_p1 = por %p801_p0, %p800_p13 }
  0x67   :  { %p803_p2 = pnand %p802_p1, %p796_p12 }
 0x132   :  { %v162_v6 = vpop.f32.mrb[0].mxu0 }
 0x133   :  { %v163_v7 = vadd.f32 %v541_v5, %v162_v6  ;;  %v597_v8 = vpop.f32.mrb[1].mxu0 }
 0x134   :  { %v165_v9 = vpop.f32.mrb[2].mxu0 }
 0x135   :  { %v166_v10 = vadd.f32 %v541_v5, %v165_v9  ;;  %v598_v11 = vpop.f32.mrb[3].mxu0  ;;  %v169_v12 = vmax.f32 %v163_v7, 0.0 }
 0x137   :  { %v170_v13 = vmax.f32 %v166_v10, 0.0 }
 0x139   :  { %v171_v14 = vpack.c.bf16 %v170_v13, %v169_v12 }
 0x13b   :  { %604 = vmatmul.mubr.msk.bf16.vlgmr.msra.gmra.mrb[0].mxu1 %vm188_vm2, %v171_v14 }
 0x13c   :  { %629 = vmatprep.mubr.msk.bf16.mxu1 %vm833_vm0, %v832_v0  ;;  %614 = vmatpush3.bf16.msra.mxu1 %v669_v15 }
 0x13d   :  { %615 = vmatprep.subr.bf16.mxu1 %v832_v0 }
 0x140   :  { %616 = vmatpush3.bf16.msra.mxu1 %v670_v16 }
 0x141   :  { %617 = vmatprep.subr.bf16.mxu1 %v832_v0 }
 0x144   :  { %618 = vmatpush3.bf16.msra.mxu1 %v671_v17 }
 0x145   :  { %619 = vmatprep.subr.bf16.mxu1 %v832_v0 }
 0x148   :  { %620 = vmatpush3.bf16.msra.mxu1 %v672_v18 }
 0x149   :  { %621 = vmatprep.subr.bf16.mxu1 %v832_v0 }
 0x14c   :  { %622 = vmatpush3.bf16.msra.mxu1 %v673_v19 }
 0x14d   :  { %623 = vmatprep.subr.bf16.mxu1 %v832_v0 }
 0x150   :  { %624 = vmatpush3.bf16.msra.mxu1 %v674_v20 }
 0x151   :  { %625 = vmatprep.subr.bf16.mxu1 %v832_v0 }
 0x154   :  { %626 = vmatpush3.bf16.msra.mxu1 %v675_v26 }
 0x155   :  { %627 = vmatprep.subr.bf16.mxu1 %v832_v0 }
 0x158   :  { %628 = vmatpush3.bf16.msra.mxu1 %v676_v27 }
 0x20e   :  { %v226_v21 = vpop.f32.mrb[0].mxu1 }
 0x20f   :  { %v605_v22 = vpop.f32.mrb[1].mxu1 }
 0x210   :  { %v229_v23 = vpop.f32.mrb[2].mxu1 }
 0x211   :  { %v233_v24 = vpack.c.bf16 %v229_v23, %v226_v21  ;;  %v606_v25 = vpop.f32.mrb[3].mxu1 }
 0x213   :  { %608 = vmatpush3.bf16.msra.mxu0 %v233_v24 }
 0x214   :  { %633 = vmatprep.subr.bf16.mxu0 %v832_v0 }
 0x216   :  { %610 = vmatmul.mubr.msk.bf16.vlgmr.msra.gmra.mrb[4].mxu0 %vm124_vm1, %v666_v2 }
 0x217   :  { %649 = vmatprep.mubr.msk.bf16.mxu0 %vm833_vm0, %v832_v0  ;;  %634 = vmatpush3.bf16.msra.mxu0 %v677_v28 }
 0x218   :  { %635 = vmatprep.subr.bf16.mxu0 %v832_v0 }
 0x21b   :  { %636 = vmatpush3.bf16.msra.mxu0 %v678_v29 }
 0x21c   :  { %637 = vmatprep.subr.bf16.mxu0 %v832_v0 }
 0x21f   :  { %638 = vmatpush3.bf16.msra.mxu0 %v679_v30 }
 0x220   :  { %639 = vmatprep.subr.bf16.mxu0 %v832_v0 }
 0x223   :  { %640 = vmatpush3.bf16.msra.mxu0 %v680_v31 }
 0x224   :  { %641 = vmatprep.subr.bf16.mxu0 %v832_v0 }
 0x227   :  { %642 = vmatpush3.bf16.msra.mxu0 %v681_v32 }
 0x228   :  { %643 = vmatprep.subr.bf16.mxu0 %v832_v0 }
 0x22b   :  { %644 = vmatpush3.bf16.msra.mxu0 %v682_v33 }
 0x22c   :  { %645 = vmatprep.subr.bf16.mxu0 %v832_v0 }
 0x22f   :  { %646 = vmatpush3.bf16.msra.mxu0 %v683_v46 }
 0x230   :  { %647 = vmatprep.subr.bf16.mxu0 %v832_v0 }
 0x233   :  { %648 = vmatpush3.bf16.msra.mxu0 %v684_v47 }
 0x2e9   :  { %v275_v35 = vpop.f32.mrb[4].mxu0 }
 0x2ea   :  { %v276_v36 = vadd.f32 %v548_v34, %v275_v35  ;;  %v611_v37 = vpop.f32.mrb[5].mxu0 }
 0x2eb   :  { %v278_v38 = vpop.f32.mrb[6].mxu0 }
 0x2ec   :  { %v284_v39 = vmul.f32 0.01, %v276_v36  ;;  %v279_v40 = vadd.f32 %v548_v34, %v278_v38  ;;  %v612_v41 = vpop.f32.mrb[7].mxu0  ;;  %vm282_vm3 = vcmp.gt.f32.partialorder %v276_v36, 0.0 }
 0x2ee   :  { %vm283_vm4 = vcmp.gt.f32.partialorder %v279_v40, 0.0  ;;  %v285_v42 = vmul.f32 0.01, %v279_v40  ;;  %v286_v43 = vsel %vm282_vm3, %v276_v36, %v284_v39 }
 0x2f0   :  { %v287_v44 = vsel %vm283_vm4, %v279_v40, %v285_v42 }
 0x2f1   :  { %v288_v45 = vpack.c.bf16 %v287_v44, %v286_v43 }
 0x2f3   :  { %630 = vmatmul.mubr.bf16.vlgmr.msra.gmra.mrb[4].mxu1 %v288_v45 }
 0x3c6   :  { %v394_v49 = vpop.f32.mrb[4].mxu1 }
 0x3c7   :  { %v395_v50 = vadd.f32 %v550_v48, %v394_v49  ;;  %v631_v51 = vpop.f32.mrb[5].mxu1 }
 0x3c8   :  { %v397_v52 = vpop.f32.mrb[6].mxu1 }
 0x3c9   :  { %v403_v53 = vmul.f32 0.01, %v395_v50  ;;  %v398_v54 = vadd.f32 %v550_v48, %v397_v52  ;;  %v632_v55 = vpop.f32.mrb[7].mxu1  ;;  %vm401_vm5 = vcmp.gt.f32.partialorder %v395_v50, 0.0 }
 0x3cb   :  { %vm402_vm6 = vcmp.gt.f32.partialorder %v398_v54, 0.0  ;;  %v404_v56 = vmul.f32 0.01, %v398_v54  ;;  %v405_v57 = vsel %vm401_vm5, %v395_v50, %v403_v53 }
 0x3cd   :  { %v406_v58 = vsel %vm402_vm6, %v398_v54, %v404_v56 }
 0x3ce   :  { %v407_v59 = vpack.c.bf16 %v406_v58, %v405_v57 }
 0x3d0   :  { %650 = vmatmul.mubr.bf16.vlgmr.msra.gmra.mrb[8].mxu0 %v407_v59 }
 0x4a3   :  { %v513_v61 = vpop.f32.mrb[8].mxu0 }
 0x4a4   :  { %v514_v62 = vadd.f32 %v559_v60, %v513_v61  ;;  %v651_v63 = vpop.f32.mrb[9].mxu0 }
 0x4a5   :  { %v516_v0 = vpop.f32.mrb[10].mxu0 }
 0x4a6   :  { %520 = vst [vmem:[#allocation11] sm:$0xff] %v514_v62  ;;  %v517_v1 = vadd.f32 %v559_v60, %v516_v0  ;;  %v652_v2 = vpop.f32.mrb[11].mxu0 }
 0x4a8   :  { %521 = vst [vmem:[#allocation11 + $0x8] sm:$0xff] %v517_v1 }
 0x4a9   :  { %806 = shalt.err (!%p803_p2)
}
 0x4aa   :  { %s807_s1 = scalar_lea.hbm %s1041_s9, 256 }
 0x4ab   :  { %p808_p3 = scmp.ne.s32.totalorder %s1041_s9, %s807_s1  ;;  %p811_p4 = scmp.lt.u32.totalorder %s807_s1, %s1041_s9 }
 0x4ad   :  { %p813_p5 = pnand %p811_p4, %p808_p3 }
 0x4af   :  { %816 = shalt.err (!%p813_p5)
}
 0x4b0   :  { %s835_s16 = smov 128   ;;  %s836_s18 = smov 8  }
 0x4b1   :  { %533 = dma.vmem_to_hbm [thread:$0]  %s528_s6, 256, %s1041_s9, [#allocation4], %s835_s16, %s835_s16, %s836_s18  }
 0x4b2   :  { %823 = dma.done.wait [#allocation4], 256  }
 0x4b3   :  { %824 = vsyncadd [#allocation4], 4294967040 }
 0x4b4   :  { %537 = vsyncpa [#allocation3], 1 }
 0x4b5   :  { %538 = vsyncpa [#allocation6], 1 }
 0x4b6   :  { %539 = vsyncpa [#allocation9], 1 }
 0x4b7   :  { %540 = vsyncpa [#allocation4], 1 }

</bundles_post_ra>
